<compile_context>
chip_gen: v6e
topology: v6e:2x2x1
jax: 0.10.0
libtpu: 0.0.40
codegen_flags: <defaults>
</compile_context>

<pallas_src>
import jax
import jax.numpy as jnp
import numpy as np
from jax.experimental import pallas as pl
from jax.experimental.pallas import tpu as pltpu

# Logical (PyTorch) dims: n_input_size = 31 for n_veh=4 / n_neighbor=1.
N_INPUT, H1, H2, H3, OUT = 31, 500, 250, 120, 1
# Padded (lane/sublane aligned) dims used by the kernel.
PI, PH1, PH2, PH3, POUT = 32, 512, 256, 128, 8


def critic_kernel(x_ref,
                  w1_ref, b1_ref,
                  w2_ref, b2_ref,
                  w3_ref, b3_ref,
                  w4_ref, b4_ref,
                  o_ref):
    # fc_1 + ReLU : bf16 x bf16 MXU matmul (K=32), f32 accumulate / epilogue.
    h = jnp.dot(x_ref[...], w1_ref[...], preferred_element_type=jnp.float32)
    h = jnp.maximum(h + b1_ref[...], 0.0)
    # fc_2 + ReLU (K=512)
    h = jnp.dot(h.astype(jnp.bfloat16), w2_ref[...],
                preferred_element_type=jnp.float32)
    h = jnp.maximum(h + b2_ref[...], 0.0)
    # fc_3 + ReLU (K=256)
    h = jnp.dot(h.astype(jnp.bfloat16), w3_ref[...],
                preferred_element_type=jnp.float32)
    h = jnp.maximum(h + b3_ref[...], 0.0)
    # fc_4: single output unit -> f32 VPU multiply + lane reduction against the
    # real w4 column (no 128-wide MXU matmul; keeps the last layer in f32).
    v = jnp.sum(h * w4_ref[...], axis=-1, keepdims=True)          # (TB, 1)
    # Broadcast across the 8 output lanes; only column 0 is real (sliced in
    # the wrapper).  Full-dim last block keeps the store simple and 16x
    # smaller than a 128-wide one.
    o_ref[...] = jnp.broadcast_to(v, o_ref.shape) + b4_ref[...]


def _round_up(n, m):
    return (n + m - 1) // m * m


def _cdiv(a, b):
    return -(-a // b)


def critic_forward(x, kern_params, *, tb=1024):
    """x: (B, N_INPUT) f32. kern_params: padded bf16 weights + f32 biases/w4."""
    B, f = x.shape
    assert f == N_INPUT

    # Balanced batch tiling (caps padding waste at < TB rows).
    n_tiles = _cdiv(B, tb)
    if B >= 1024:
        # v7x has 2 TensorCores: make sure the "parallel" batch axis has at
        # least 2 grid steps when the batch is big enough to split.
        n_tiles = max(n_tiles, 2)
    TB = _round_up(_cdiv(B, n_tiles), 16)   # 16: bf16 sublane-tile aligned
    Bp = n_tiles * TB

    # bf16 input padded 31 -> 32 lanes only (not 128): ~8x fewer streamed
    # input bytes than the old f32/128-lane path, no in-kernel cast of x.
    x_p = jnp.zeros((Bp, PI), jnp.bfloat16).at[:B, :N_INPUT].set(
        x.astype(jnp.bfloat16))

    order = ("w1", "b1", "w2", "b2", "w3", "b3", "w4", "b4")
    const_map = lambda i: (0, 0)            # weights/biases pinned in VMEM
    param_specs = [pl.BlockSpec(kern_params[k].shape, const_map) for k in order]

    flops = 2 * Bp * (PI * PH1 + PH1 * PH2 + PH2 * PH3 + PH3)
    bytes_accessed = (x_p.size * x_p.dtype.itemsize + Bp * POUT * 4
                      + sum(int(kern_params[k].size) * kern_params[k].dtype.itemsize
                            for k in order))

    out = pl.pallas_call(
        critic_kernel,
        out_shape=jax.ShapeDtypeStruct((Bp, POUT), jnp.float32),
        grid=(n_tiles,),
        in_specs=[pl.BlockSpec((TB, PI), lambda i: (i, 0))] + param_specs,
        out_specs=pl.BlockSpec((TB, POUT), lambda i: (i, 0)),
        compiler_params=pltpu.CompilerParams(
            dimension_semantics=("parallel",),
            vmem_limit_bytes=48 * 1024 * 1024),
        cost_estimate=pl.CostEstimate(flops=flops, transcendentals=0,
                                      bytes_accessed=bytes_accessed),
    )(x_p, *(kern_params[k] for k in order))

    return out[:B, :OUT]


def _pad2(a, rows, cols):
    return jnp.pad(a, ((0, rows - a.shape[0]), (0, cols - a.shape[1])))


def init_params(key):
    """Mirrors the PyTorch init: W ~ Normal(0, 0.1), bias ~ U(+-1/sqrt(fan_in)).
    Returns (kern_params, ref_params):
      kern_params: (in,out)-transposed, zero-padded to aligned dims;
                   w1..w3 bf16, w4 stored as a f32 (1, 128) row, biases f32.
      ref_params : exact f32 logical-shape params for the reference check."""
    dims = [(N_INPUT, H1), (H1, H2), (H2, H3), (H3, OUT)]
    keys = jax.random.split(key, 2 * len(dims))
    ref_params = {}
    for i, (fin, fout) in enumerate(dims):
        w = 0.1 * jax.random.normal(keys[2 * i], (fin, fout), dtype=jnp.float32)
        bound = 1.0 / np.sqrt(fin)
        b = jax.random.uniform(keys[2 * i + 1], (1, fout), minval=-bound,
                               maxval=bound, dtype=jnp.float32)
        ref_params[f"w{i+1}"] = w                     # (in, out)
        ref_params[f"b{i+1}"] = b                     # (1, out)

    kern_params = {
        "w1": _pad2(ref_params["w1"], PI, PH1).astype(jnp.bfloat16),   # (32,512)
        "b1": _pad2(ref_params["b1"], 1, PH1),                          # (1,512) f32
        "w2": _pad2(ref_params["w2"], PH1, PH2).astype(jnp.bfloat16),  # (512,256)
        "b2": _pad2(ref_params["b2"], 1, PH2),                          # (1,256) f32
        "w3": _pad2(ref_params["w3"], PH2, PH3).astype(jnp.bfloat16),  # (256,128)
        "b3": _pad2(ref_params["b3"], 1, PH3),                          # (1,128) f32
        "w4": _pad2(ref_params["w4"].T, 1, PH3),                        # (1,128) f32
        "b4": _pad2(ref_params["b4"], 1, POUT),                         # (1,8)  f32
    }
    return kern_params, ref_params


def critic_reference_f32(x, p):
    """Pure f32 PyTorch-equivalent forward."""
    h = jnp.maximum(x @ p["w1"] + p["b1"], 0.0)
    h = jnp.maximum(h @ p["w2"] + p["b2"], 0.0)
    h = jnp.maximum(h @ p["w3"] + p["b3"], 0.0)
    return h @ p["w4"] + p["b4"]


def critic_reference_quantized(x, kp):
    """Reference mirroring the kernel's bf16-weight/activation, f32-acc math."""
    B = x.shape[0]
    h = jnp.zeros((B, PI), jnp.bfloat16).at[:, :N_INPUT].set(
        x.astype(jnp.bfloat16))
    h = jnp.dot(h, kp["w1"], preferred_element_type=jnp.float32) + kp["b1"]
    h = jnp.maximum(h, 0.0)
    h = jnp.dot(h.astype(jnp.bfloat16), kp["w2"],
                preferred_element_type=jnp.float32) + kp["b2"]
    h = jnp.maximum(h, 0.0)
    h = jnp.dot(h.astype(jnp.bfloat16), kp["w3"],
                preferred_element_type=jnp.float32) + kp["b3"]
    h = jnp.maximum(h, 0.0)
    return jnp.sum(h * kp["w4"], axis=-1, keepdims=True) + kp["b4"][:, :1]


if __name__ == "__main__":
    key = jax.random.PRNGKey(0)
    pkey, xkey = jax.random.split(key)
    kern_params, ref_params = init_params(pkey)

    # Small single-tile case.
    B = 8
    x = jax.random.normal(xkey, (B, N_INPUT), dtype=jnp.float32)
    out = jax.block_until_ready(critic_forward(x, kern_params))
    assert out.shape == (B, OUT)

    # Tight check: kernel matches the exact bf16-weight/activation math.
    ref_q = critic_reference_quantized(x, kern_params)
    np.testing.assert_allclose(np.asarray(out), np.asarray(ref_q),
                               rtol=2e-3, atol=2e-3)
    # Semantics check vs. pure-f32 PyTorch-equivalent forward (tolerance covers
    # bf16 quantization of weights and hidden activations).
    ref_f32 = critic_reference_f32(x, ref_params)
    np.testing.assert_allclose(np.asarray(out), np.asarray(ref_f32),
                               rtol=5e-2, atol=5e-2)

    # Multi-tile case (exercises batch padding + VMEM-resident weights across
    # several grid steps) with a tiny tile so it stays cheap.
    B2 = 40
    x2 = jax.random.normal(jax.random.PRNGKey(1), (B2, N_INPUT),
                           dtype=jnp.float32)
    out2 = jax.block_until_ready(critic_forward(x2, kern_params, tb=16))
    assert out2.shape == (B2, OUT)
    np.testing.assert_allclose(np.asarray(out2),
                               np.asarray(critic_reference_quantized(x2, kern_params)),
                               rtol=2e-3, atol=2e-3)

    print("KERNEL_OK")
</pallas_src>

<mosaic_0001>
module attributes {stable_mosaic.version = 11 : i64} {
  func.func @critic_kernel(%arg0: i32, %arg1: memref<16x32xbf16, #tpu.memory_space<vmem>>, %arg2: memref<32x512xbf16, #tpu.memory_space<vmem>>, %arg3: memref<1x512xf32, #tpu.memory_space<vmem>>, %arg4: memref<512x256xbf16, #tpu.memory_space<vmem>>, %arg5: memref<1x256xf32, #tpu.memory_space<vmem>>, %arg6: memref<256x128xbf16, #tpu.memory_space<vmem>>, %arg7: memref<1x128xf32, #tpu.memory_space<vmem>>, %arg8: memref<1x128xf32, #tpu.memory_space<vmem>>, %arg9: memref<1x8xf32, #tpu.memory_space<vmem>>, %arg10: memref<16x8xf32, #tpu.memory_space<vmem>>) attributes {dimension_semantics = [#tpu.dimension_semantics<parallel>], iteration_bounds = array<i64: 1>, scalar_prefetch = 0 : i64, scratch_operands = 0 : i64, tpu.core_type = #tpu.core_type<tc>, window_params = [{transform_indices = @transform_0, window_bounds = array<i64: 16, 32>}, {pipeline_mode = #tpu.pipeline_mode<synchronous>, transform_indices = @transform_1, window_bounds = array<i64: 32, 512>}, {pipeline_mode = #tpu.pipeline_mode<synchronous>, transform_indices = @transform_2, window_bounds = array<i64: 1, 512>}, {pipeline_mode = #tpu.pipeline_mode<synchronous>, transform_indices = @transform_3, window_bounds = array<i64: 512, 256>}, {pipeline_mode = #tpu.pipeline_mode<synchronous>, transform_indices = @transform_4, window_bounds = array<i64: 1, 256>}, {pipeline_mode = #tpu.pipeline_mode<synchronous>, transform_indices = @transform_5, window_bounds = array<i64: 256, 128>}, {pipeline_mode = #tpu.pipeline_mode<synchronous>, transform_indices = @transform_6, window_bounds = array<i64: 1, 128>}, {pipeline_mode = #tpu.pipeline_mode<synchronous>, transform_indices = @transform_7, window_bounds = array<i64: 1, 128>}, {pipeline_mode = #tpu.pipeline_mode<synchronous>, transform_indices = @transform_8, window_bounds = array<i64: 1, 8>}, {transform_indices = @transform_9, window_bounds = array<i64: 16, 8>}]} {
    %c0 = arith.constant 0 : index
    %c0_0 = arith.constant 0 : index
    %0 = vector.load %arg1[%c0, %c0_0] : memref<16x32xbf16, #tpu.memory_space<vmem>>, vector<16x32xbf16>
    %c0_1 = arith.constant 0 : index
    %c0_2 = arith.constant 0 : index
    %1 = vector.load %arg2[%c0_1, %c0_2] : memref<32x512xbf16, #tpu.memory_space<vmem>>, vector<32x512xbf16>
    %cst = arith.constant dense<0.000000e+00> : vector<16x512xf32>
    %2 = tpu.matmul %0, %1, %cst {dimension_numbers = #tpu.dot_dimension_numbers<[1], [0], [0], [1], [0, 0, 1, 1], [], []>} : vector<16x32xbf16>, vector<32x512xbf16>, vector<16x512xf32> -> vector<16x512xf32>
    %c0_3 = arith.constant 0 : index
    %c0_4 = arith.constant 0 : index
    %3 = vector.load %arg3[%c0_3, %c0_4] : memref<1x512xf32, #tpu.memory_space<vmem>>, vector<1x512xf32>
    %4 = vector.broadcast %3 : vector<1x512xf32> to vector<16x512xf32>
    %5 = arith.addf %2, %4 : vector<16x512xf32>
    %cst_5 = arith.constant 0.000000e+00 : f32
    %6 = vector.broadcast %cst_5 : f32 to vector<16x512xf32>
    %7 = arith.maximumf %5, %6 : vector<16x512xf32>
    %8 = arith.truncf %7 : vector<16x512xf32> to vector<16x512xbf16>
    %c0_6 = arith.constant 0 : index
    %c0_7 = arith.constant 0 : index
    %9 = vector.load %arg4[%c0_6, %c0_7] : memref<512x256xbf16, #tpu.memory_space<vmem>>, vector<512x256xbf16>
    %cst_8 = arith.constant dense<0.000000e+00> : vector<16x256xf32>
    %10 = tpu.matmul %8, %9, %cst_8 {dimension_numbers = #tpu.dot_dimension_numbers<[1], [0], [0], [1], [0, 0, 1, 1], [], []>} : vector<16x512xbf16>, vector<512x256xbf16>, vector<16x256xf32> -> vector<16x256xf32>
    %c0_9 = arith.constant 0 : index
    %c0_10 = arith.constant 0 : index
    %11 = vector.load %arg5[%c0_9, %c0_10] : memref<1x256xf32, #tpu.memory_space<vmem>>, vector<1x256xf32>
    %12 = vector.broadcast %11 : vector<1x256xf32> to vector<16x256xf32>
    %13 = arith.addf %10, %12 : vector<16x256xf32>
    %cst_11 = arith.constant 0.000000e+00 : f32
    %14 = vector.broadcast %cst_11 : f32 to vector<16x256xf32>
    %15 = arith.maximumf %13, %14 : vector<16x256xf32>
    %16 = arith.truncf %15 : vector<16x256xf32> to vector<16x256xbf16>
    %c0_12 = arith.constant 0 : index
    %c0_13 = arith.constant 0 : index
    %17 = vector.load %arg6[%c0_12, %c0_13] : memref<256x128xbf16, #tpu.memory_space<vmem>>, vector<256x128xbf16>
    %cst_14 = arith.constant dense<0.000000e+00> : vector<16x128xf32>
    %18 = tpu.matmul %16, %17, %cst_14 {dimension_numbers = #tpu.dot_dimension_numbers<[1], [0], [0], [1], [0, 0, 1, 1], [], []>} : vector<16x256xbf16>, vector<256x128xbf16>, vector<16x128xf32> -> vector<16x128xf32>
    %c0_15 = arith.constant 0 : index
    %c0_16 = arith.constant 0 : index
    %19 = vector.load %arg7[%c0_15, %c0_16] : memref<1x128xf32, #tpu.memory_space<vmem>>, vector<1x128xf32>
    %20 = vector.broadcast %19 : vector<1x128xf32> to vector<16x128xf32>
    %21 = arith.addf %18, %20 : vector<16x128xf32>
    %cst_17 = arith.constant 0.000000e+00 : f32
    %22 = vector.broadcast %cst_17 : f32 to vector<16x128xf32>
    %23 = arith.maximumf %21, %22 : vector<16x128xf32>
    %c0_18 = arith.constant 0 : index
    %c0_19 = arith.constant 0 : index
    %24 = vector.load %arg8[%c0_18, %c0_19] : memref<1x128xf32, #tpu.memory_space<vmem>>, vector<1x128xf32>
    %25 = vector.broadcast %24 : vector<1x128xf32> to vector<16x128xf32>
    %26 = arith.mulf %23, %25 : vector<16x128xf32>
    %cst_20 = arith.constant dense<0.000000e+00> : vector<16xf32>
    %27 = vector.multi_reduction <add>, %26, %cst_20 [1] : vector<16x128xf32> to vector<16xf32>
    %28 = vector.shape_cast %27 : vector<16xf32> to vector<16x1xf32>
    %29 = vector.shape_cast %28 : vector<16x1xf32> to vector<16x1xf32>
    %30 = vector.broadcast %29 : vector<16x1xf32> to vector<16x8xf32>
    %c0_21 = arith.constant 0 : index
    %c0_22 = arith.constant 0 : index
    %31 = vector.load %arg9[%c0_21, %c0_22] : memref<1x8xf32, #tpu.memory_space<vmem>>, vector<1x8xf32>
    %32 = vector.broadcast %31 : vector<1x8xf32> to vector<16x8xf32>
    %33 = arith.addf %30, %32 : vector<16x8xf32>
    %c0_23 = arith.constant 0 : index
    %c0_24 = arith.constant 0 : index
    %34 = vector.load %arg10[%c0_23, %c0_24] : memref<16x8xf32, #tpu.memory_space<vmem>>, vector<16x8xf32>
    tpu.vector_store %arg10[%c0_23, %c0_24], %33 {strides = array<i32>} : memref<16x8xf32, #tpu.memory_space<vmem>>, vector<16x8xf32>,
    return
  }
  func.func @transform_0(%arg0: i32) -> (i32, i32) {
    %c0_i32 = arith.constant 0 : i32
    %c0_i32_0 = arith.constant 0 : i32
    return %arg0, %c0_i32 : i32, i32
  }
  func.func @transform_1(%arg0: i32) -> (i32, i32) {
    %c0_i32 = arith.constant 0 : i32
    %c0_i32_0 = arith.constant 0 : i32
    %c0_i32_1 = arith.constant 0 : i32
    return %c0_i32, %c0_i32_0 : i32, i32
  }
  func.func @transform_2(%arg0: i32) -> (i32, i32) {
    %c0_i32 = arith.constant 0 : i32
    %c0_i32_0 = arith.constant 0 : i32
    %c0_i32_1 = arith.constant 0 : i32
    return %c0_i32, %c0_i32_0 : i32, i32
  }
  func.func @transform_3(%arg0: i32) -> (i32, i32) {
    %c0_i32 = arith.constant 0 : i32
    %c0_i32_0 = arith.constant 0 : i32
    %c0_i32_1 = arith.constant 0 : i32
    return %c0_i32, %c0_i32_0 : i32, i32
  }
  func.func @transform_4(%arg0: i32) -> (i32, i32) {
    %c0_i32 = arith.constant 0 : i32
    %c0_i32_0 = arith.constant 0 : i32
    %c0_i32_1 = arith.constant 0 : i32
    return %c0_i32, %c0_i32_0 : i32, i32
  }
  func.func @transform_5(%arg0: i32) -> (i32, i32) {
    %c0_i32 = arith.constant 0 : i32
    %c0_i32_0 = arith.constant 0 : i32
    %c0_i32_1 = arith.constant 0 : i32
    return %c0_i32, %c0_i32_0 : i32, i32
  }
  func.func @transform_6(%arg0: i32) -> (i32, i32) {
    %c0_i32 = arith.constant 0 : i32
    %c0_i32_0 = arith.constant 0 : i32
    %c0_i32_1 = arith.constant 0 : i32
    return %c0_i32, %c0_i32_0 : i32, i32
  }
  func.func @transform_7(%arg0: i32) -> (i32, i32) {
    %c0_i32 = arith.constant 0 : i32
    %c0_i32_0 = arith.constant 0 : i32
    %c0_i32_1 = arith.constant 0 : i32
    return %c0_i32, %c0_i32_0 : i32, i32
  }
  func.func @transform_8(%arg0: i32) -> (i32, i32) {
    %c0_i32 = arith.constant 0 : i32
    %c0_i32_0 = arith.constant 0 : i32
    %c0_i32_1 = arith.constant 0 : i32
    return %c0_i32, %c0_i32_0 : i32, i32
  }
  func.func @transform_9(%arg0: i32) -> (i32, i32) {
    %c0_i32 = arith.constant 0 : i32
    %c0_i32_0 = arith.constant 0 : i32
    return %arg0, %c0_i32 : i32, i32
  }
}

</mosaic_0001>

<bundles_post_ra>
// kernel: tpu_custom_call.1
= control target key start
LH: loop header
LB: loop body
LE: loop exit
PB: predicated region body
PF: predicated region fallthrough
CT: control target
= control target key end

     0   :  { %14 = vsyncpa [#allocation3], 0  ;;  %s1446_s0 = inlined_call_operand.hbm [shape: bf16[16,32], index: 0, kind: input, shape index: {}]   ;;  %s1447_s1 = inlined_call_operand.hbm [shape: bf16[32,512], index: 1, kind: input, shape index: {}]   ;;  %s1448_s2 = inlined_call_operand.hbm [shape: f32[1,512], index: 2, kind: input, shape index: {}]   ;;  %s1449_s3 = inlined_call_operand.hbm [shape: bf16[512,256], index: 3, kind: input, shape index: {}]   ;;  %s1450_s4 = inlined_call_operand.vmem [shape: f32[1,256], index: 4, kind: input, shape index: {}]   ;;  %s1451_s5 = inlined_call_operand.hbm [shape: bf16[256,128], index: 5, kind: input, shape index: {}]   ;;  %s1452_s6 = inlined_call_operand.vmem [shape: f32[1,128], index: 6, kind: input, shape index: {}]   ;;  %s1453_s7 = inlined_call_operand.vmem [shape: f32[1,128], index: 7, kind: input, shape index: {}]   ;;  %s1454_s8 = inlined_call_operand.vmem [shape: f32[1,8], index: 8, kind: input, shape index: {}]   ;;  %s1455_s9 = inlined_call_operand.vmem [shape: f32[16,8], index: 9, kind: output, shape index: {}]  }
   0x1   :  { %15 = vsyncpa [#allocation5], 0 }
   0x2   :  { %16 = vsyncpa [#allocation8], 0  ;;  %s1335_s30 = smov [#allocation4]  }
   0x3   :  { %s34_s10 = sshll.u32 %s1335_s30, 4  ;;  %s35_s10 = int_to_ptr.vmem [resolvable:$true] %s34_s10 }
   0x4   :  { %s1237_s11 = scalar_lea.vmem %s35_s10, 1024  ;;  %p1242_p1 = scmp.lt.s32.totalorder %s35_s10, %s35_s10 }
   0x5   :  { %p1238_p0 = scmp.ne.s32.totalorder %s35_s10, %s1237_s11  ;;  %p1243_p2 = scmp.lt.s32.totalorder %s1237_s11, %s1237_s11 }
   0x7   :  { %p1244_p3 = por %p1243_p2, %p1242_p1 }
   0x9   :  { %p1245_p4 = pnand %p1244_p3, %p1238_p0 }
   0xb   :  { %1248 = shalt.err (!%p1245_p4)
}
   0xc   :  { %s1336_s12 = smov 256   ;;  %s1337_s13 = smov 16  }
   0xd   :  { %40 = dma.hbm_to_vmem [thread:$0]  %s1447_s1, 1024, %s35_s10, [#allocation5], %s1336_s12, %s1336_s12, %s1337_s13  }
   0xe   :  { %s1338_s16 = smov [#allocation7]  }
   0xf   :  { %s56_s17 = sshll.u32 %s1338_s16, 4  ;;  %s57_s17 = int_to_ptr.vmem [resolvable:$true] %s56_s17 }
  0x10   :  { %s1257_s18 = scalar_lea.vmem %s57_s17, 8192  ;;  %p1262_p6 = scmp.lt.s32.totalorder %s57_s17, %s57_s17 }
  0x11   :  { %p1258_p5 = scmp.ne.s32.totalorder %s57_s17, %s1257_s18  ;;  %p1263_p7 = scmp.lt.s32.totalorder %s1257_s18, %s1257_s18 }
  0x13   :  { %p1264_p8 = por %p1263_p7, %p1262_p6 }
  0x15   :  { %p1265_p9 = pnand %p1264_p8, %p1258_p5 }
  0x17   :  { %1268 = shalt.err (!%p1265_p9)
}
  0x18   :  { %s1339_s19 = smov 128   ;;  %s1340_s20 = smov 8  }
  0x19   :  { %62 = dma.hbm_to_vmem [thread:$0]  %s1449_s3, 8192, %s57_s17, [#allocation8], %s1339_s19, %s1339_s19, %s1340_s20  }
  0x1a   :  { %s1341_s23 = smov [#allocation2]  }
  0x1b   :  { %s22_s24 = sshll.u32 %s1341_s23, 4  ;;  %s23_s24 = int_to_ptr.vmem [resolvable:$true] %s22_s24 }
  0x1c   :  { %s1277_s1 = scalar_lea.vmem %s23_s24, 128  ;;  %p1282_p11 = scmp.lt.s32.totalorder %s23_s24, %s23_s24 }
  0x1d   :  { %p1278_p10 = scmp.ne.s32.totalorder %s23_s24, %s1277_s1  ;;  %p1283_p12 = scmp.lt.s32.totalorder %s1277_s1, %s1277_s1 }
  0x1f   :  { %p1284_p13 = por %p1283_p12, %p1282_p11 }
  0x21   :  { %p1285_p0 = pnand %p1284_p13, %p1278_p10 }
  0x23   :  { %1288 = shalt.err (!%p1285_p0)
}
  0x24   :  { %s1342_s25 = smov 64   ;;  %s1343_s26 = smov 4  }
  0x25   :  { %28 = dma.hbm_to_vmem [thread:$0]  %s1446_s0, 128, %s23_s24, [#allocation3], %s1342_s25, %s1342_s25, %s1343_s26  }
  0x26   :  { %s1344_s29 = smov [#allocation6]   ;;  %s1345_s3 = smov [#allocation9]  }
  0x27   :  { %s47_s30 = sshll.u32 %s1344_s29, 4  ;;  %s70_s10 = sshll.u32 %s1345_s3, 4  ;;  %s48_s30 = int_to_ptr.vmem [resolvable:$true] %s47_s30  ;;  %s71_s10 = int_to_ptr.vmem [resolvable:$true] %s70_s10 }
  0x28   :  { %s1297_s11 = scalar_lea.vmem %s48_s30, 64  ;;  %p1302_p2 = scmp.lt.s32.totalorder %s48_s30, %s48_s30 }
  0x29   :  { %p1298_p1 = scmp.ne.s32.totalorder %s48_s30, %s1297_s11  ;;  %p1303_p3 = scmp.lt.s32.totalorder %s1297_s11, %s1297_s11 }
  0x2b   :  { %p1304_p4 = por %p1303_p3, %p1302_p2 }
  0x2d   :  { %p1305_p5 = pnand %p1304_p4, %p1298_p1 }
  0x2f   :  { %1308 = shalt.err (!%p1305_p5)
}
  0x30   :  { %50 = dma.hbm_to_vmem [thread:$0]  %s1448_s2, 64, %s48_s30, [#allocation5]  }
  0x31   :  { %s1317_s14 = scalar_lea.vmem %s71_s10, 2048  ;;  %p1322_p7 = scmp.lt.s32.totalorder %s71_s10, %s71_s10 }
  0x32   :  { %p1318_p6 = scmp.ne.s32.totalorder %s71_s10, %s1317_s14  ;;  %p1323_p8 = scmp.lt.s32.totalorder %s1317_s14, %s1317_s14 }
  0x34   :  { %p1324_p9 = por %p1323_p8, %p1322_p7 }
  0x36   :  { %p1325_p10 = pnand %p1324_p9, %p1318_p6 }
  0x38   :  { %1328 = shalt.err (!%p1325_p10)
}
  0x39   :  { %76 = dma.hbm_to_vmem [thread:$0]  %s1451_s5, 2048, %s71_s10, [#allocation8], %s1342_s25, %s1342_s25, %s1343_s26  }
  0x3a   :  { %1329 = dma.done.wait [#allocation3], 128  }
  0x3b   :  { %1330 = vsyncadd [#allocation3], 4294967168 }
  0x3c   :  { %1331 = dma.done.wait [#allocation5], 1088  }
  0x3d   :  { %1332 = vsyncadd [#allocation5], 4294966208 }
  0x3e   :  { %1333 = dma.done.wait [#allocation8], 10240  }
  0x3f   :  { %1334 = vsyncadd [#allocation8], 4294957056  ;;  %v1346_v0 = vmov 0   ;;  %v1104_v1 = vld [vmem:[#allocation4 + $0x24] ss:$16 sps:$4 sm:$0xff]   ;;  %v1110_v6 = vld [vmem:[#allocation2] sm:$0xff]  }
  0x40   :  { %212 = vmatprep.mubr.bf16.mxu1 %v1346_v0  ;;  %v1106_v2 = vld [vmem:[#allocation4 + $0x20] ss:$16 sps:$4 sm:$0xff]   ;;  %192 = vmatprep.subr.bf16.mxu1 %v1104_v1  ;;  %v1107_v3 = vld [vmem:[#allocation4 + $0x4] ss:$16 sps:$4 sm:$0xff]   ;;  %v1113_v5 = vld [vmem:[#allocation4 + $0x2c] ss:$16 sps:$4 sm:$0xff]  }
  0x41   :  { %193 = vmatpush1.bf16.msra.mxu1 %v1106_v2  ;;  %v1109_v4 = vld [vmem:[#allocation4] ss:$16 sps:$4 sm:$0xff]   ;;  %v1111_v7 = vld [vmem:[#allocation4 + $0x28] ss:$16 sps:$4 sm:$0xff]   ;;  %vm176_vm0 = vcmask 261120   ;;  %vm966_vm1 = vcmask 64512  }
  0x42   :  { %194 = vmatprep.subr.bf16.mxu1 %v1107_v3  ;;  %v1117_v8 = vld [vmem:[#allocation7 + $0x74] ss:$8 sps:$4 sm:$0xff]   ;;  %v1119_v9 = vld [vmem:[#allocation7 + $0x70] ss:$8 sps:$4 sm:$0xff]   ;;  %v1120_v11 = vld [vmem:[#allocation7 + $0x64] ss:$8 sps:$4 sm:$0xff]  }
  0x43   :  { %v1116_v10 = vld [vmem:[#allocation4 + $0xc] ss:$16 sps:$4 sm:$0xff]   ;;  %674 = vmatprep.subr.bf16.mxu0 %v1117_v8  ;;  %v1114_v13 = vld [vmem:[#allocation4 + $0x8] ss:$16 sps:$4 sm:$0xff]  }
  0x44   :  { %675 = vmatpush1.bf16.msra.mxu0 %v1119_v9  ;;  %v1122_v12 = vld [vmem:[#allocation7 + $0x60] ss:$8 sps:$4 sm:$0xff]   ;;  %v1123_v14 = vld [vmem:[#allocation7 + $0x54] ss:$8 sps:$4 sm:$0xff]   ;;  %v1125_v16 = vld [vmem:[#allocation7 + $0x170] ss:$8 sps:$4 sm:$0xff]  }
  0x45   :  { %195 = vmatpush1.bf16.msra.mxu1 %v1109_v4  ;;  %676 = vmatprep.subr.bf16.mxu0 %v1120_v11  ;;  %v1127_v15 = vld [vmem:[#allocation7 + $0x174] ss:$8 sps:$4 sm:$0xff]   ;;  %v1128_v17 = vld [vmem:[#allocation7 + $0x50] ss:$8 sps:$4 sm:$0xff]   ;;  %v1129_v18 = vld [vmem:[#allocation7 + $0x44] ss:$8 sps:$4 sm:$0xff]   ;;  %v111_v11 = vlaneseq }
  0x46   :  { %235 = vmatprep.subr.bf16.mxu1 %v1113_v5  ;;  %v1133_v19 = vld [vmem:[#allocation7 + $0x164] ss:$8 sps:$4 sm:$0xff]   ;;  %v1134_v20 = vld [vmem:[#allocation7 + $0x40] ss:$8 sps:$4 sm:$0xff]   ;;  %v1135_v22 = vld [vmem:[#allocation7 + $0x34] ss:$8 sps:$4 sm:$0xff]  }
  0x47   :  { %v1131_v21 = vld [vmem:[#allocation7 + $0x160] ss:$8 sps:$4 sm:$0xff]   ;;  %v1139_v23 = vld [vmem:[#allocation7 + $0x154] ss:$8 sps:$4 sm:$0xff]   ;;  %v1137_v24 = vld [vmem:[#allocation7 + $0x150] ss:$8 sps:$4 sm:$0xff]  }
  0x48   :  { %985 = vmatmul.mubr.msk.bf16.vlgmr.msra.gmra.mxu1 %vm176_vm0, %v1110_v6  ;;  %677 = vmatpush1.bf16.msra.mxu0 %v1122_v12  ;;  %v1140_v25 = vld [vmem:[#allocation7 + $0x30] ss:$8 sps:$4 sm:$0xff]   ;;  %v1141_v26 = vld [vmem:[#allocation7 + $0x24] ss:$8 sps:$4 sm:$0xff]   ;;  %v1146_v28 = vld [vmem:[#allocation7 + $0x20] ss:$8 sps:$4 sm:$0xff]  }
  0x49   :  { %236 = vmatpush1.bf16.msra.mxu1 %v1111_v7  ;;  %255 = vmatprep.mubr.bf16.mxu1 %v1346_v0  ;;  %v1145_v27 = vld [vmem:[#allocation7 + $0x144] ss:$8 sps:$4 sm:$0xff]   ;;  %v1143_v29 = vld [vmem:[#allocation7 + $0x140] ss:$8 sps:$4 sm:$0xff]   ;;  %v1147_v30 = vld [vmem:[#allocation7 + $0x14] ss:$8 sps:$4 sm:$0xff]  }
  0x4a   :  { %237 = vmatprep.subr.bf16.mxu1 %v1116_v10  ;;  %678 = vmatprep.subr.bf16.mxu0 %v1123_v14  ;;  %v1151_v31 = vld [vmem:[#allocation7 + $0x134] ss:$8 sps:$4 sm:$0xff]   ;;  %v1149_v32 = vld [vmem:[#allocation7 + $0x130] ss:$8 sps:$4 sm:$0xff]   ;;  %v1153_v34 = vld [vmem:[#allocation7 + $0x4] ss:$8 sps:$4 sm:$0xff]  }
  0x4b   :  { %v1152_v33 = vld [vmem:[#allocation7 + $0x10] ss:$8 sps:$4 sm:$0xff]   ;;  %v1157_v35 = vld [vmem:[#allocation7 + $0x124] ss:$8 sps:$4 sm:$0xff]   ;;  %v1158_v36 = vld [vmem:[#allocation7] ss:$8 sps:$4 sm:$0xff]  }
  0x4c   :  { %679 = vmatpush1.bf16.msra.mxu0 %v1128_v17  ;;  %v1155_v37 = vld [vmem:[#allocation7 + $0x120] ss:$8 sps:$4 sm:$0xff]   ;;  %v1159_v38 = vld [vmem:[#allocation7 + $0xf4] ss:$8 sps:$4 sm:$0xff]   ;;  %v1161_v40 = vld [vmem:[#allocation7 + $0x110] ss:$8 sps:$4 sm:$0xff]  }
  0x4d   :  { %238 = vmatpush1.bf16.msra.mxu1 %v1114_v13  ;;  %680 = vmatprep.subr.bf16.mxu0 %v1129_v18  ;;  %v1163_v39 = vld [vmem:[#allocation7 + $0x114] ss:$8 sps:$4 sm:$0xff]   ;;  %v1164_v41 = vld [vmem:[#allocation7 + $0xf0] ss:$8 sps:$4 sm:$0xff]   ;;  %v1165_v42 = vld [vmem:[#allocation7 + $0xe4] ss:$8 sps:$4 sm:$0xff]  }
  0x4e   :  { %717 = vmatprep.subr.bf16.mxu1 %v1127_v15  ;;  %v1169_v43 = vld [vmem:[#allocation7 + $0x104] ss:$8 sps:$4 sm:$0xff]   ;;  %v1170_v44 = vld [vmem:[#allocation7 + $0xe0] ss:$8 sps:$4 sm:$0xff]   ;;  %v1171_v46 = vld [vmem:[#allocation7 + $0xd4] ss:$8 sps:$4 sm:$0xff]  }
  0x4f   :  { %v1167_v45 = vld [vmem:[#allocation7 + $0x100] ss:$8 sps:$4 sm:$0xff]   ;;  %v1175_v47 = vld [vmem:[#allocation7 + $0x1f4] ss:$8 sps:$4 sm:$0xff]   ;;  %v1176_v48 = vld [vmem:[#allocation7 + $0xd0] ss:$8 sps:$4 sm:$0xff]  }
  0x50   :  { %986 = vmatmul.mubr.msk.bf16.vlgmr.msra.gmra.mxu1 %vm176_vm0, %v1110_v6  ;;  %681 = vmatpush1.bf16.msra.mxu0 %v1134_v20  ;;  %v1173_v49 = vld [vmem:[#allocation7 + $0x1f0] ss:$8 sps:$4 sm:$0xff]   ;;  %v1177_v50 = vld [vmem:[#allocation7 + $0xc4] ss:$8 sps:$4 sm:$0xff]   ;;  %v1182_v52 = vld [vmem:[#allocation7 + $0xc0] ss:$8 sps:$4 sm:$0xff]  }
  0x51   :  { %718 = vmatpush1.bf16.msra.mxu1 %v1125_v16  ;;  %682 = vmatprep.subr.bf16.mxu0 %v1135_v22  ;;  %v1181_v51 = vld [vmem:[#allocation7 + $0x1e4] ss:$8 sps:$4 sm:$0xff]   ;;  %v1179_v53 = vld [vmem:[#allocation7 + $0x1e0] ss:$8 sps:$4 sm:$0xff]   ;;  %v1183_v54 = vld [vmem:[#allocation7 + $0xb4] ss:$8 sps:$4 sm:$0xff]  }
  0x52   :  { %719 = vmatprep.subr.bf16.mxu1 %v1133_v19  ;;  %v1187_v55 = vld [vmem:[#allocation7 + $0x1d4] ss:$8 sps:$4 sm:$0xff]   ;;  %v1188_v56 = vld [vmem:[#allocation7 + $0xb0] ss:$8 sps:$4 sm:$0xff]   ;;  %v1189_v58 = vld [vmem:[#allocation7 + $0xa4] ss:$8 sps:$4 sm:$0xff]  }
  0x53   :  { %v1185_v57 = vld [vmem:[#allocation7 + $0x1d0] ss:$8 sps:$4 sm:$0xff]   ;;  %v1193_v59 = vld [vmem:[#allocation7 + $0x1c4] ss:$8 sps:$4 sm:$0xff]   ;;  %v1191_v60 = vld [vmem:[#allocation7 + $0x1c0] ss:$8 sps:$4 sm:$0xff]  }
  0x54   :  { %683 = vmatpush1.bf16.msra.mxu0 %v1140_v25  ;;  %v1194_v61 = vld [vmem:[#allocation7 + $0xa0] ss:$8 sps:$4 sm:$0xff]   ;;  %v1195_v62 = vld [vmem:[#allocation7 + $0x94] ss:$8 sps:$4 sm:$0xff]   ;;  %v1197_v0 = vld [vmem:[#allocation7 + $0x1b0] ss:$8 sps:$4 sm:$0xff]  }
  0x55   :  { %720 = vmatpush1.bf16.msra.mxu1 %v1131_v21  ;;  %684 = vmatprep.subr.bf16.mxu0 %v1141_v26  ;;  %v1199_v63 = vld [vmem:[#allocation7 + $0x1b4] ss:$8 sps:$4 sm:$0xff]   ;;  %v1200_v1 = vld [vmem:[#allocation7 + $0x90] ss:$8 sps:$4 sm:$0xff]   ;;  %v1201_v2 = vld [vmem:[#allocation7 + $0x84] ss:$8 sps:$4 sm:$0xff]  }
  0x56   :  { %721 = vmatprep.subr.bf16.mxu1 %v1139_v23  ;;  %v1205_v3 = vld [vmem:[#allocation7 + $0x1a4] ss:$8 sps:$4 sm:$0xff]   ;;  %v1203_v4 = vld [vmem:[#allocation7 + $0x1a0] ss:$8 sps:$4 sm:$0xff]   ;;  %v1209_v6 = vld [vmem:[#allocation7 + $0x194] ss:$8 sps:$4 sm:$0xff]  }
  0x57   :  { %v1206_v5 = vld [vmem:[#allocation7 + $0x80] ss:$8 sps:$4 sm:$0xff]   ;;  %v1207_v7 = vld [vmem:[#allocation7 + $0x190] ss:$8 sps:$4 sm:$0xff]   ;;  %v1212_v8 = vld [vmem:[#allocation7 + $0x184] ss:$8 sps:$4 sm:$0xff]  }
  0x58   :  { %685 = vmatpush1.bf16.msra.mxu0 %v1146_v28  ;;  %v1210_v9 = vld [vmem:[#allocation7 + $0x180] ss:$8 sps:$4 sm:$0xff]   ;;  %v1213_v10 = vld [vmem:[#allocation9 + $0x78] sm:$0xff]   ;;  %v1414_v12 = vshrl.u32 %v111_v11, 7 }
  0x59   :  { %722 = vmatpush1.bf16.msra.mxu1 %v1137_v24  ;;  %686 = vmatprep.subr.bf16.mxu0 %v1147_v30  ;;  %v109_v15 = vld [vmem:[#allocation6] sm:$0xf] }
  0x5a   :  { %723 = vmatprep.subr.bf16.mxu1 %v1145_v27  ;;  %v117_v13 = vsub.s32 1, %v1414_v12  ;;  %v113_v14 = vsub.s32 0, %v1414_v12  ;;  %v125_v23 = vsub.s32 3, %v1414_v12  ;;  %v121_v26 = vsub.s32 2, %v1414_v12 }
  0x5c   :  { %687 = vmatpush1.bf16.msra.mxu0 %v1152_v33  ;;  %v118_v17 = vrot.slane %v109_v15, %v117_v13  ;;  %v114_v18 = vrot.slane %v109_v15, %v113_v14 }
  0x5d   :  { %724 = vmatpush1.bf16.msra.mxu1 %v1143_v29  ;;  %688 = vmatprep.subr.bf16.mxu0 %v1153_v34  ;;  %v122_v34 = vrot.slane %v109_v15, %v121_v26 }
  0x5e   :  { %725 = vmatprep.subr.bf16.mxu1 %v1151_v31 }
  0x60   :  { %689 = vmatpush1.bf16.msra.mxu0 %v1158_v36 }
  0x61   :  { %726 = vmatpush1.bf16.msra.mxu1 %v1149_v32  ;;  %690 = vmatprep.subr.bf16.mxu0 %v1159_v38  ;;  %v126_v32 = vrot.slane %v109_v15, %v125_v23 }
  0x62   :  { %727 = vmatprep.subr.bf16.mxu1 %v1157_v35 }
  0x64   :  { %691 = vmatpush2.bf16.msra.mxu0 %v1164_v41 }
  0x65   :  { %728 = vmatpush1.bf16.msra.mxu1 %v1155_v37  ;;  %692 = vmatprep.subr.bf16.mxu0 %v1165_v42  ;;  %v1214_v37 = vld [vmem:[#allocation9 + $0x38] sm:$0xff]  }
  0x66   :  { %729 = vmatprep.subr.bf16.mxu1 %v1163_v39 }
  0x68   :  { %693 = vmatpush2.bf16.msra.mxu0 %v1170_v44 }
  0x69   :  { %730 = vmatpush1.bf16.msra.mxu1 %v1161_v40  ;;  %694 = vmatprep.subr.bf16.mxu0 %v1171_v46  ;;  %v1215_v40 = vld [vmem:[#allocation9 + $0x70] sm:$0xff]  }
  0x6a   :  { %731 = vmatprep.subr.bf16.mxu1 %v1169_v43  ;;  %v1216_v46 = vld [vmem:[#allocation9 + $0x30] sm:$0xff]  }
  0x6c   :  { %695 = vmatpush2.bf16.msra.mxu0 %v1176_v48  ;;  %v1217_v48 = vld [vmem:[#allocation9 + $0x68] sm:$0xff]  }
  0x6d   :  { %732 = vmatpush1.bf16.msra.mxu1 %v1167_v45  ;;  %696 = vmatprep.subr.bf16.mxu0 %v1177_v50 }
  0x6e   :  { %733 = vmatprep.subr.bf16.mxu1 %v1175_v47 }
  0x70   :  { %697 = vmatpush2.bf16.msra.mxu0 %v1182_v52 }
  0x71   :  { %734 = vmatpush2.bf16.msra.mxu1 %v1173_v49  ;;  %698 = vmatprep.subr.bf16.mxu0 %v1183_v54 }
  0x72   :  { %735 = vmatprep.subr.bf16.mxu1 %v1181_v51 }
  0x74   :  { %699 = vmatpush2.bf16.msra.mxu0 %v1188_v56  ;;  %v1220_v56 = vld [vmem:[#allocation9 + $0x20] sm:$0xff]  }
  0x75   :  { %736 = vmatpush2.bf16.msra.mxu1 %v1179_v53  ;;  %700 = vmatprep.subr.bf16.mxu0 %v1189_v58  ;;  %v1218_v53 = vld [vmem:[#allocation9 + $0x28] sm:$0xff]   ;;  %v1222_v58 = vld [vmem:[#allocation9 + $0x18] sm:$0xff]  }
  0x76   :  { %737 = vmatprep.subr.bf16.mxu1 %v1187_v55  ;;  %v1219_v55 = vld [vmem:[#allocation9 + $0x60] sm:$0xff]  }
  0x78   :  { %701 = vmatpush2.bf16.msra.mxu0 %v1194_v61  ;;  %v1225_v61 = vld [vmem:[#allocation9 + $0x48] sm:$0xff]  }
  0x79   :  { %738 = vmatpush2.bf16.msra.mxu1 %v1185_v57  ;;  %702 = vmatprep.subr.bf16.mxu0 %v1195_v62  ;;  %v1221_v57 = vld [vmem:[#allocation9 + $0x58] sm:$0xff]   ;;  %v1226_v62 = vld [vmem:[#allocation9 + $0x8] sm:$0xff]  }
  0x7a   :  { %739 = vmatprep.subr.bf16.mxu1 %v1193_v59  ;;  %v1223_v59 = vld [vmem:[#allocation9 + $0x50] sm:$0xff]  }
  0x7c   :  { %703 = vmatpush2.bf16.msra.mxu0 %v1200_v1 }
  0x7d   :  { %740 = vmatpush2.bf16.msra.mxu1 %v1191_v60  ;;  %704 = vmatprep.subr.bf16.mxu0 %v1201_v2  ;;  %v1224_v60 = vld [vmem:[#allocation9 + $0x10] sm:$0xff]  }
  0x7e   :  { %741 = vmatprep.subr.bf16.mxu1 %v1199_v63  ;;  %v1227_v63 = vld [vmem:[#allocation9 + $0x40] sm:$0xff]  }
  0x80   :  { %705 = vmatpush2.bf16.msra.mxu0 %v1206_v5 }
  0x81   :  { %742 = vmatpush2.bf16.msra.mxu1 %v1197_v0  ;;  %1070 = vmatprep.subr.bf16.mxu0 %v1213_v10  ;;  %v1228_v0 = vld [vmem:[#allocation9] sm:$0xff]  }
  0x82   :  { %743 = vmatprep.subr.bf16.mxu1 %v1205_v3  ;;  %v342_v3 = vld [vmem:[%s1450_s4] sm:$0x3] }
  0x83   :  { %v351_v5 = vrot.slane %v342_v3, %v117_v13 }
  0x85   :  { %744 = vmatpush2.bf16.msra.mxu1 %v1203_v4 }
  0x86   :  { %745 = vmatprep.subr.bf16.mxu1 %v1209_v6  ;;  %v347_v6 = vrot.slane %v342_v3, %v113_v14 }
  0x89   :  { %746 = vmatpush2.bf16.msra.mxu1 %v1207_v7 }
  0x8a   :  { %747 = vmatprep.subr.bf16.mxu1 %v1212_v8 }
  0x8d   :  { %748 = vmatpush2.bf16.msra.mxu1 %v1210_v9 }
 0x108   :  { %v214_v16 = vpop.f32.mrf.mxu1 }
 0x109   :  { %v215_v24 = vadd.f32 %v214_v16, %v114_v18 }
 0x10a   :  { %v216_v19 = vpop.f32.mrf.mxu1 }
 0x10b   :  { %v217_v21 = vadd.f32 %v216_v19, %v118_v17  ;;  %v266_v33 = vmax.f32 %v215_v24, 0.0 }
 0x10c   :  { %v218_v20 = vpop.f32.mrf.mxu1 }
 0x10d   :  { %v219_v22 = vadd.f32 %v218_v20, %v114_v18  ;;  %v267_v30 = vmax.f32 %v217_v21, 0.0 }
 0x10e   :  { %v220_v25 = vpop.f32.mrf.mxu1 }
 0x10f   :  { %v221_v27 = vadd.f32 %v220_v25, %v118_v17  ;;  %v270_v28 = vmax.f32 %v219_v22, 0.0 }
 0x110   :  { %v257_v29 = vpop.f32.mrf.mxu1 }
 0x111   :  { %v271_v31 = vmax.f32 %v221_v27, 0.0  ;;  %v274_v38 = vpack.c.bf16 %v270_v28, %v266_v33  ;;  %v258_v43 = vadd.f32 %v257_v29, %v122_v34  ;;  %v1051_v28 = vld [vmem:[%s1452_s6] ss:$0 sm:$0xff] }
 0x112   :  { %v259_v35 = vpop.f32.mrf.mxu1  ;;  %v1068_v33 = vld [vmem:[%s1453_s7] ss:$0 sm:$0xff] }
 0x113   :  { %v275_v36 = vpack.c.bf16 %v271_v31, %v267_v30  ;;  %v260_v41 = vadd.f32 %v259_v35, %v126_v32  ;;  %v268_v51 = vmax.f32 %v258_v43, 0.0 }
 0x114   :  { %v261_v39 = vpop.f32.mrf.mxu1 }
 0x115   :  { %v262_v42 = vadd.f32 %v261_v39, %v122_v34  ;;  %706 = vmatprep.mubr.bf16.mxu0 %v275_v36  ;;  %v269_v49 = vmax.f32 %v260_v41, 0.0 }
 0x116   :  { %v263_v44 = vpop.f32.mrf.mxu1  ;;  %707 = vmatmul.mubr.bf16.vlgmr.msra.gmra.mxu0 %v274_v38 }
 0x117   :  { %v264_v45 = vadd.f32 %v263_v44, %v126_v32  ;;  %1071 = vmatpush3.bf16.msra.mxu0 %v1214_v37  ;;  %v272_v47 = vmax.f32 %v262_v42, 0.0 }
 0x118   :  { %1072 = vmatprep.subr.bf16.mxu0 %v1215_v40  ;;  %v1069_v40 = vld [vmem:[%s1454_s8] ss:$0 sm:$0xff] }
 0x119   :  { %v273_v50 = vmax.f32 %v264_v45, 0.0  ;;  %v276_v54 = vpack.c.bf16 %v272_v47, %v268_v51 }
 0x11b   :  { %v277_v52 = vpack.c.bf16 %v273_v50, %v269_v49  ;;  %1073 = vmatpush3.bf16.msra.mxu0 %v1216_v46 }
 0x11c   :  { %1074 = vmatprep.subr.bf16.mxu0 %v1217_v48 }
 0x11d   :  { %749 = vmatprep.mubr.bf16.mxu1 %v277_v52 }
 0x11e   :  { %750 = vmatmul.mubr.bf16.vlgmr.msra.gmra.mxu1 %v276_v54 }
 0x11f   :  { %1075 = vmatpush3.bf16.msra.mxu0 %v1218_v53 }
 0x120   :  { %1076 = vmatprep.subr.bf16.mxu0 %v1219_v55 }
 0x123   :  { %1077 = vmatpush3.bf16.msra.mxu0 %v1220_v56 }
 0x124   :  { %1078 = vmatprep.subr.bf16.mxu0 %v1221_v57 }
 0x127   :  { %1079 = vmatpush3.bf16.msra.mxu0 %v1222_v58 }
 0x128   :  { %1080 = vmatprep.subr.bf16.mxu0 %v1223_v59 }
 0x12b   :  { %1081 = vmatpush3.bf16.msra.mxu0 %v1224_v60 }
 0x12c   :  { %1082 = vmatprep.subr.bf16.mxu0 %v1225_v61 }
 0x12f   :  { %1083 = vmatpush3.bf16.msra.mxu0 %v1226_v62 }
 0x130   :  { %1084 = vmatprep.subr.bf16.mxu0 %v1227_v63 }
 0x133   :  { %1085 = vmatpush3.bf16.msra.mxu0 %v1228_v0 }
 0x1d6   :  { %v708_v1 = vpop.f32.mrf.mxu0 }
 0x1d7   :  { %v709_v15 = vadd.f32 %v708_v1, %v347_v6 }
 0x1d8   :  { %v710_v2 = vpop.f32.mrf.mxu0 }
 0x1d9   :  { %v711_v10 = vadd.f32 %v710_v2, %v351_v5 }
 0x1da   :  { %v712_v4 = vpop.f32.mrf.mxu0 }
 0x1db   :  { %v713_v11 = vadd.f32 %v712_v4, %v347_v6 }
 0x1dc   :  { %v714_v8 = vpop.f32.mrf.mxu0 }
 0x1dd   :  { %v715_v17 = vadd.f32 %v714_v8, %v351_v5 }
 0x1de   :  { %v751_v7 = vpop.f32.mrf.mxu1 }
 0x1df   :  { %v752_v20 = vadd.f32 %v751_v7, %v709_v15 }
 0x1e0   :  { %v753_v9 = vpop.f32.mrf.mxu1 }
 0x1e1   :  { %v754_v18 = vadd.f32 %v753_v9, %v711_v10  ;;  %v760_v13 = vmax.f32 %v752_v20, 0.0 }
 0x1e2   :  { %v755_v16 = vpop.f32.mrf.mxu1 }
 0x1e3   :  { %v756_v19 = vadd.f32 %v755_v16, %v713_v11  ;;  %v761_v24 = vmax.f32 %v754_v18, 0.0 }
 0x1e4   :  { %v757_v21 = vpop.f32.mrf.mxu1 }
 0x1e5   :  { %v758_v22 = vadd.f32 %v757_v21, %v715_v17  ;;  %v762_v23 = vmax.f32 %v756_v19, 0.0 }
 0x1e7   :  { %v763_v25 = vmax.f32 %v758_v22, 0.0  ;;  %v764_v12 = vpack.c.bf16 %v762_v23, %v760_v13 }
 0x1e9   :  { %v765_v26 = vpack.c.bf16 %v763_v25, %v761_v24 }
 0x1eb   :  { %933 = vmatprep.mubr.bf16.mxu0 %v765_v26 }
 0x1ec   :  { %934 = vmatmul.mubr.bf16.vlgmr.msra.gmra.mxu0 %v764_v12 }
 0x2ac   :  { %v1086_v14 = vpop.f32.mrf.mxu0 }
 0x2ae   :  { %v1087_v27 = vpop.f32.mrf.mxu0 }
 0x2af   :  { %v1088_v29 = vadd.f32 %v1087_v27, %v1086_v14 }
 0x2b0   :  { %v1089_v30 = vpop.f32.mrf.mxu0 }
 0x2b1   :  { %v936_v31 = vadd.f32 %v1088_v29, %v1051_v28 }
 0x2b2   :  { %v1090_v32 = vpop.f32.mrf.mxu0 }
 0x2b3   :  { %v1091_v34 = vadd.f32 %v1090_v32, %v1089_v30  ;;  %v942_v35 = vmax.f32 %v936_v31, 0.0 }
 0x2b5   :  { %v939_v36 = vadd.f32 %v1091_v34, %v1051_v28  ;;  %v951_v37 = vmul.f32 %v1068_v33, %v942_v35 }
 0x2b7   :  { %v943_v38 = vmax.f32 %v939_v36, 0.0  ;;  %953 = vadd.xlane.f32.xlu0 %v951_v37 }
 0x2b9   :  { %v952_v39 = vmul.f32 %v1068_v33, %v943_v38 }
 0x2bb   :  { %955 = vadd.xlane.f32.xlu0 %v952_v39 }
 0x340   :  { %v954_v41 = vpop.xlane.xlu0 %953 }
 0x341   :  { %v964_v42 = vadd.f32 %v1069_v40, %v954_v41 }
 0x343   :  { %967 = vst.msk [vmem:[%s1455_s9] sm:$0xff] %vm966_vm1, %v964_v42 }
 0x344   :  { %v956_v43 = vpop.xlane.xlu0 %955 }
 0x345   :  { %v965_v44 = vadd.f32 %v1069_v40, %v956_v43 }
 0x347   :  { %968 = vst.msk [vmem:[%s1455_s9 + $0x8] sm:$0xff] %vm966_vm1, %v965_v44 }
 0x348   :  { %973 = vsyncpa [#allocation3], 1 }
 0x349   :  { %974 = vsyncpa [#allocation5], 1 }
 0x34a   :  { %975 = vsyncpa [#allocation8], 1 }

</bundles_post_ra>
